<compile_context>
chip_gen: v7x
topology: tpu7x:2x2x1
jax: 0.10.0
libtpu: 0.0.40
codegen_flags: <defaults>
</compile_context>

<pallas_src>
import math

import jax
import jax.numpy as jnp
from jax.experimental import pallas as pl
from jax.experimental.pallas import tpu as pltpu

HIDDEN = 32          # hidden width of the DQN MLP
LANES = 128          # TPU lane width; slab rows are 128-lane dense

# Packed-parameter slab row layout (all section starts are multiples of 8):
OFF_W1 = 0                    # rows [0:8)   : W1 in rows [0:input_size), lanes [0:HIDDEN)
OFF_B = 8                     # rows [8:16)  : row 8 = b1, row 9 = b2, row 10 = b3
OFF_W2 = 16                   # rows [16:48) : W2 (HIDDEN rows, HIDDEN lanes used)
OFF_W3 = OFF_W2 + HIDDEN      # rows [48:80) : W3 (HIDDEN rows, action_size lanes used)
SLAB_ROWS = OFF_W3 + HIDDEN   # 80 rows -> 80*128*4 B = 40 KiB (fits trivially in VMEM)


def pack_params(params):
    """Pack all weights/biases into one lane-dense (80, 128) f32 slab.

    Done once per weight update (outside the hot forward loop), so the forward
    pallas_call only issues 2 input DMAs and moves no structural-zero rows.
    """
    input_size, hidden = params["w1"].shape
    action_size = params["w3"].shape[1]
    assert input_size <= 8, "W1 section holds at most 8 input features"
    assert hidden == HIDDEN and hidden <= LANES
    assert action_size <= LANES

    slab = jnp.zeros((SLAB_ROWS, LANES), jnp.float32)
    slab = slab.at[OFF_W1:OFF_W1 + input_size, :hidden].set(params["w1"])
    slab = slab.at[OFF_B + 0, :hidden].set(params["b1"].reshape(-1))
    slab = slab.at[OFF_B + 1, :hidden].set(params["b2"].reshape(-1))
    slab = slab.at[OFF_B + 2, :action_size].set(params["b3"].reshape(-1))
    slab = slab.at[OFF_W2:OFF_W2 + hidden, :hidden].set(params["w2"])
    slab = slab.at[OFF_W3:OFF_W3 + hidden, :action_size].set(params["w3"])
    return slab


def _make_kernel(input_size, action_size, with_action):
    """Kernel factory: works for both the single-shot and batch-gridded calls."""

    def kernel(x_ref, p_ref, *out_refs):
        q_ref = out_refs[0]
        xv = x_ref[...]                                      # (tile, input_size)

        # Static ref slices into the packed slab (zero-cost views -> loads).
        w1 = p_ref[OFF_W1:OFF_W1 + input_size, :]            # (input_size, 128)
        b1 = p_ref[OFF_B + 0:OFF_B + 1, :]                   # (1, 128)
        b2 = p_ref[OFF_B + 1:OFF_B + 2, :]
        b3 = p_ref[OFF_B + 2:OFF_B + 3, :]
        w2 = p_ref[OFF_W2:OFF_W2 + HIDDEN, :]                # (32, 128)
        w3 = p_ref[OFF_W3:OFF_W3 + HIDDEN, :]                # (32, 128)

        # Layer 1: Linear + ReLU (lanes >= HIDDEN stay exactly 0).
        h1 = jnp.maximum(
            jnp.dot(xv, w1, preferred_element_type=jnp.float32) + b1, 0.0)
        # Layer 2: K=32 dot against the real hidden lanes only (slab carries no
        # zero-padded weight rows; the lane sub-slice is cheap vs. the DMA saved).
        h2 = jnp.maximum(
            jnp.dot(h1[:, :HIDDEN], w2, preferred_element_type=jnp.float32) + b2, 0.0)
        # Layer 3: Linear (no activation). q lanes >= action_size are exactly 0.
        q = jnp.dot(h2[:, :HIDDEN], w3, preferred_element_type=jnp.float32) + b3

        # Write exactly (tile, action_size): no wrapper slice, tiny writeback DMA.
        q_ref[...] = q[:, :action_size].astype(q_ref.dtype)

        if with_action:
            a_ref = out_refs[1]
            lane = jax.lax.broadcasted_iota(jnp.int32, q.shape, 1)
            # Mask padded lanes to -inf BEFORE the reduce (padded lanes are 0.0,
            # which would win whenever all real Q-values are negative).
            qm = jnp.where(lane < action_size, q, jnp.float32(-jnp.inf))
            qmax = jnp.max(qm, axis=-1, keepdims=True)
            # First index achieving the max (matches argmax tie-breaking).
            idx = jnp.where(qm == qmax, lane.astype(jnp.float32), jnp.float32(LANES))
            a_ref[...] = jnp.min(idx, axis=-1, keepdims=True).astype(a_ref.dtype)

    return kernel


def q_network_forward(x, slab, *, input_size, action_size, return_greedy_action=False):
    """Fused 3-layer MLP forward.

    x: (batch, input_size) f32, slab: pack_params(...).
    Returns q (batch, action_size) f32; if return_greedy_action also returns
    argmax_a q (batch, 1) int32 computed inside the same kernel.
    """
    batch = x.shape[0]
    kernel = _make_kernel(input_size, action_size, return_greedy_action)

    q_shape = jax.ShapeDtypeStruct((batch, action_size), jnp.float32)
    a_shape = jax.ShapeDtypeStruct((batch, 1), jnp.int32)
    out_shape = (q_shape, a_shape) if return_greedy_action else q_shape

    flops = 2 * batch * (input_size * HIDDEN + HIDDEN * HIDDEN + HIDDEN * action_size)
    out_bytes = batch * action_size * 4 + (batch * 4 if return_greedy_action else 0)
    cost = pl.CostEstimate(flops=flops, transcendentals=0,
                           bytes_accessed=x.size * 4 + slab.size * 4 + out_bytes)

    # Training-size batches: tile the batch so (a) v7x's two TensorCores split
    # the work ("parallel"), (b) v6e/v7x see M>=256 per MXU push, (c) x/output
    # tiles pipeline against compute. Slab index_map is constant -> one DMA.
    tile = 0
    if batch >= 512:
        for cand in (512, 256):
            if batch % cand == 0:
                tile = cand
                break

    if tile:
        q_spec = pl.BlockSpec((tile, action_size), lambda i: (i, 0))
        a_spec = pl.BlockSpec((tile, 1), lambda i: (i, 0))
        out_specs = (q_spec, a_spec) if return_greedy_action else q_spec
        return pl.pallas_call(
            kernel,
            out_shape=out_shape,
            grid=(batch // tile,),
            in_specs=[pl.BlockSpec((tile, input_size), lambda i: (i, 0)),
                      pl.BlockSpec((SLAB_ROWS, LANES), lambda i: (0, 0))],
            out_specs=out_specs,
            compiler_params=pltpu.CompilerParams(dimension_semantics=("parallel",)),
            cost_estimate=cost,
        )(x, slab)

    # Launch-bound (rollout) regime: single shot, whole problem VMEM-resident.
    # No batch padding and no output lane padding: full-array blocks are exempt
    # from the (8,128) divisibility rule, and the consumer reads q directly.
    vmem = pl.BlockSpec(memory_space=pltpu.MemorySpace.VMEM)
    out_specs = (vmem, vmem) if return_greedy_action else vmem
    return pl.pallas_call(
        kernel,
        out_shape=out_shape,
        in_specs=[vmem, vmem],
        out_specs=out_specs,
        cost_estimate=cost,
    )(x, slab)


def init_params(key, input_size, hidden, action_size):
    """Deterministic PyTorch-style (Kaiming-uniform-ish) Linear init."""
    ks = jax.random.split(key, 6)

    def linear_init(kw, kb, fan_in, fan_out):
        bound = 1.0 / math.sqrt(fan_in)
        w = jax.random.uniform(kw, (fan_in, fan_out), jnp.float32, -bound, bound)
        b = jax.random.uniform(kb, (1, fan_out), jnp.float32, -bound, bound)
        return w, b

    w1, b1 = linear_init(ks[0], ks[1], input_size, hidden)
    w2, b2 = linear_init(ks[2], ks[3], hidden, hidden)
    w3, b3 = linear_init(ks[4], ks[5], hidden, action_size)
    return {"w1": w1, "b1": b1, "w2": w2, "b2": b2, "w3": w3, "b3": b3}


def reference_forward(x, p):
    h1 = jnp.maximum(x @ p["w1"] + p["b1"], 0.0)
    h2 = jnp.maximum(h1 @ p["w2"] + p["b2"], 0.0)
    return h2 @ p["w3"] + p["b3"]


if __name__ == "__main__":
    # CartPole-style sizes: state dim 4, 2 actions, hidden 32.
    input_size = 4
    action_size = 2

    key = jax.random.PRNGKey(0)
    k_params, k_x, k_xb = jax.random.split(key, 3)

    params = init_params(k_params, input_size, HIDDEN, action_size)
    slab = pack_params(params)                      # done once per weight update

    # --- rollout-size batch: single-shot, launch-bound path --------------------
    batch = 128
    x = jax.random.normal(k_x, (batch, input_size), jnp.float32)
    q = q_network_forward(x, slab, input_size=input_size, action_size=action_size)
    q = jax.block_until_ready(q)
    ref = reference_forward(x, params)
    assert q.shape == (batch, action_size), q.shape
    assert jnp.allclose(q, ref, atol=1e-5, rtol=1e-5), "q mismatch vs reference"

    # Fused DQN consumer: Q-values + greedy action from the same pallas_call.
    q2, act = q_network_forward(x, slab, input_size=input_size,
                                action_size=action_size, return_greedy_action=True)
    jax.block_until_ready((q2, act))
    assert jnp.allclose(q2, ref, atol=1e-5, rtol=1e-5), "q mismatch (fused argmax path)"
    assert jnp.array_equal(act[:, 0], jnp.argmax(ref, axis=-1).astype(jnp.int32)), \
        "greedy action mismatch vs reference argmax"

    # --- training-size batch: gridded path (both v7x TCs / pipelined tiles) ----
    xb = jax.random.normal(k_xb, (1024, input_size), jnp.float32)
    qb = q_network_forward(xb, slab, input_size=input_size, action_size=action_size)
    qb = jax.block_until_ready(qb)
    refb = reference_forward(xb, params)
    assert qb.shape == (1024, action_size), qb.shape
    assert jnp.allclose(qb, refb, atol=1e-5, rtol=1e-5), "q mismatch (gridded path)"

    print("KERNEL_OK")
</pallas_src>

<mosaic_0001>
module attributes {stable_mosaic.version = 11 : i64} {
  func.func @kernel(%arg0: memref<128x4xf32, #tpu.memory_space<vmem>>, %arg1: memref<80x128xf32, #tpu.memory_space<vmem>>, %arg2: memref<128x2xf32, #tpu.memory_space<vmem>>) attributes {dimension_semantics = [], scalar_prefetch = 0 : i64, scratch_operands = 0 : i64, tpu.core_type = #tpu.core_type<tc>} {
    %c0 = arith.constant 0 : index
    %c0_0 = arith.constant 0 : index
    %0 = vector.load %arg0[%c0, %c0_0] : memref<128x4xf32, #tpu.memory_space<vmem>>, vector<128x4xf32>
    %c0_1 = arith.constant 0 : index
    %c0_2 = arith.constant 0 : index
    %1 = vector.load %arg1[%c0_1, %c0_2] : memref<80x128xf32, #tpu.memory_space<vmem>>, vector<4x128xf32>
    %c8 = arith.constant 8 : index
    %c0_3 = arith.constant 0 : index
    %2 = vector.load %arg1[%c8, %c0_3] : memref<80x128xf32, #tpu.memory_space<vmem>>, vector<1x128xf32>
    %c9 = arith.constant 9 : index
    %c0_4 = arith.constant 0 : index
    %3 = vector.load %arg1[%c9, %c0_4] : memref<80x128xf32, #tpu.memory_space<vmem>>, vector<1x128xf32>
    %c10 = arith.constant 10 : index
    %c0_5 = arith.constant 0 : index
    %4 = vector.load %arg1[%c10, %c0_5] : memref<80x128xf32, #tpu.memory_space<vmem>>, vector<1x128xf32>
    %c16 = arith.constant 16 : index
    %c0_6 = arith.constant 0 : index
    %5 = vector.load %arg1[%c16, %c0_6] : memref<80x128xf32, #tpu.memory_space<vmem>>, vector<32x128xf32>
    %c48 = arith.constant 48 : index
    %c0_7 = arith.constant 0 : index
    %6 = vector.load %arg1[%c48, %c0_7] : memref<80x128xf32, #tpu.memory_space<vmem>>, vector<32x128xf32>
    %cst = arith.constant dense<0.000000e+00> : vector<128x128xf32>
    %7 = tpu.matmul %0, %1, %cst {dimension_numbers = #tpu.dot_dimension_numbers<[1], [0], [0], [1], [0, 0, 1, 1], [], []>} : vector<128x4xf32>, vector<4x128xf32>, vector<128x128xf32> -> vector<128x128xf32>
    %8 = vector.broadcast %2 : vector<1x128xf32> to vector<128x128xf32>
    %9 = arith.addf %7, %8 : vector<128x128xf32>
    %cst_8 = arith.constant 0.000000e+00 : f32
    %10 = vector.broadcast %cst_8 : f32 to vector<128x128xf32>
    %11 = arith.maximumf %9, %10 : vector<128x128xf32>
    %12 = vector.extract_strided_slice %11 {offsets = [0, 0], sizes = [128, 32], strides = [1, 1]} : vector<128x128xf32> to vector<128x32xf32>
    %cst_9 = arith.constant dense<0.000000e+00> : vector<128x128xf32>
    %13 = tpu.matmul %12, %5, %cst_9 {dimension_numbers = #tpu.dot_dimension_numbers<[1], [0], [0], [1], [0, 0, 1, 1], [], []>} : vector<128x32xf32>, vector<32x128xf32>, vector<128x128xf32> -> vector<128x128xf32>
    %14 = vector.broadcast %3 : vector<1x128xf32> to vector<128x128xf32>
    %15 = arith.addf %13, %14 : vector<128x128xf32>
    %cst_10 = arith.constant 0.000000e+00 : f32
    %16 = vector.broadcast %cst_10 : f32 to vector<128x128xf32>
    %17 = arith.maximumf %15, %16 : vector<128x128xf32>
    %18 = vector.extract_strided_slice %17 {offsets = [0, 0], sizes = [128, 32], strides = [1, 1]} : vector<128x128xf32> to vector<128x32xf32>
    %cst_11 = arith.constant dense<0.000000e+00> : vector<128x128xf32>
    %19 = tpu.matmul %18, %6, %cst_11 {dimension_numbers = #tpu.dot_dimension_numbers<[1], [0], [0], [1], [0, 0, 1, 1], [], []>} : vector<128x32xf32>, vector<32x128xf32>, vector<128x128xf32> -> vector<128x128xf32>
    %20 = vector.broadcast %4 : vector<1x128xf32> to vector<128x128xf32>
    %21 = arith.addf %19, %20 : vector<128x128xf32>
    %22 = vector.extract_strided_slice %21 {offsets = [0, 0], sizes = [128, 2], strides = [1, 1]} : vector<128x128xf32> to vector<128x2xf32>
    %c0_12 = arith.constant 0 : index
    %c0_13 = arith.constant 0 : index
    %23 = vector.load %arg2[%c0_12, %c0_13] : memref<128x2xf32, #tpu.memory_space<vmem>>, vector<128x2xf32>
    tpu.vector_store %arg2[%c0_12, %c0_13], %22 {strides = array<i32>} : memref<128x2xf32, #tpu.memory_space<vmem>>, vector<128x2xf32>,
    return
  }
}

</mosaic_0001>

<bundles_post_ra>
// kernel: tpu_custom_call.1
= control target key start
LH: loop header
LB: loop body
LE: loop exit
PB: predicated region body
PF: predicated region fallthrough
CT: control target
= control target key end

     0   :  { %vm92_vm0 = vcmask 1043456   ;;  %vm43_vm1 = vcmask 31744   ;;  %vm261_vm2 = vcmask 261120   ;;  %vm668_vm3 = vcmask 15360   ;;  %s1117_s1 = inlined_call_operand.vmem [shape: f32[80,128], index: 1, kind: input, shape index: {}]   ;;  %s1118_s0 = inlined_call_operand.vmem [shape: f32[128,4], index: 0, kind: input, shape index: {}]   ;;  %s1119_s2 = inlined_call_operand.vmem [shape: f32[128,2], index: 2, kind: output, shape index: {}]  }
   0x1   :  { %v27_v0 = vld [vmem:[%s1117_s1] sm:$0xf]  ;;  %v12_v2 = vld [vmem:[%s1118_s0 + $0x8] sm:$0xff]  ;;  %v13_v3 = vld [vmem:[%s1118_s0 + $0x10] sm:$0xff] }
   0x2   :  { %v11_v1 = vld [vmem:[%s1118_s0] sm:$0xff]  ;;  %798 = vmatprep.subr.msk.mxu0 %vm92_vm0, %v27_v0  ;;  %904 = vmatprep.subr.msk.mxu1 %vm92_vm0, %v27_v0  ;;  %v20_v5 = vld [vmem:[%s1118_s0 + $0x48] sm:$0xff]  ;;  %v21_v6 = vld [vmem:[%s1118_s0 + $0x50] sm:$0xff] }
   0x3   :  { %800 = vmatprep.mubr.msk.f32.mxu0 %vm43_vm1, %v11_v1  ;;  %799 = vmatpush3.msk.msra.mxu0 %vm92_vm0, %v27_v0  ;;  %v19_v4 = vld [vmem:[%s1118_s0 + $0x40] sm:$0xff]  ;;  %v14_v7 = vld [vmem:[%s1118_s0 + $0x18] sm:$0xff]  ;;  %v31_v10 = vld [vmem:[%s1117_s1 + $0x10] sm:$0xff] }
   0x4   :  { %801 = vmatmul.mubr.msk.f32.vlgmr.msra.gmra.mrb[0].mxu0 %vm43_vm1, %v12_v2  ;;  %905 = vmatpush3.msk.msra.mxu1 %vm92_vm0, %v27_v0  ;;  %v15_v8 = vld [vmem:[%s1118_s0 + $0x20] sm:$0xff]  ;;  %v22_v9 = vld [vmem:[%s1118_s0 + $0x58] sm:$0xff]  ;;  %v34_v13 = vld [vmem:[%s1117_s1 + $0x28] sm:$0xff] }
   0x5   :  { %803 = vmatprep.mubr.msk.f32.mxu0 %vm43_vm1, %v13_v3  ;;  %812 = vmatprep.mubr.msk.f32.mxu1 %vm43_vm1, %v19_v4  ;;  %v32_v11 = vld [vmem:[%s1117_s1 + $0x18] sm:$0xff]  ;;  %v33_v12 = vld [vmem:[%s1117_s1 + $0x20] sm:$0xff]  ;;  %v16_v17 = vld [vmem:[%s1118_s0 + $0x28] sm:$0xff] }
   0x6   :  { %813 = vmatmul.mubr.msk.f32.vlgmr.msra.gmra.mrb[0].mxu1 %vm43_vm1, %v20_v5  ;;  %v23_v14 = vld [vmem:[%s1118_s0 + $0x60] sm:$0xff]  ;;  %v888_v15 = vpack.c.bf16 %v32_v11, %v31_v10  ;;  %v892_v16 = vpack.c.bf16 %v34_v13, %v33_v12  ;;  %v17_v18 = vld [vmem:[%s1118_s0 + $0x30] sm:$0xff]  ;;  %v24_v19 = vld [vmem:[%s1118_s0 + $0x68] sm:$0xff] }
   0x7   :  { %815 = vmatprep.mubr.msk.f32.mxu1 %vm43_vm1, %v21_v6  ;;  %v25_v20 = vld [vmem:[%s1118_s0 + $0x70] sm:$0xff]  ;;  %v18_v21 = vld [vmem:[%s1118_s0 + $0x38] sm:$0xff]  ;;  %v37_v25 = vld [vmem:[%s1117_s1 + $0x40] sm:$0xff] }
   0x8   :  { %804 = vmatmul.mubr.msk.f32.gmra.mrb[2].mxu0 %vm43_vm1, %v14_v7  ;;  %889 = vmatprep.subr.bf16.mxu1 %v888_v15  ;;  %v26_v22 = vld [vmem:[%s1118_s0 + $0x78] sm:$0xff]  ;;  %v35_v23 = vld [vmem:[%s1117_s1 + $0x30] sm:$0xff]  ;;  %v38_v27 = vld [vmem:[%s1117_s1 + $0x48] sm:$0xff] }
   0x9   :  { %806 = vmatprep.mubr.msk.f32.mxu0 %vm43_vm1, %v15_v8  ;;  %891 = vmatpush3.bf16.msra.mxu1 %v888_v15  ;;  %v36_v24 = vld [vmem:[%s1117_s1 + $0x38] sm:$0xff]  ;;  %v900_v28 = vpack.c.bf16 %v38_v27, %v37_v25  ;;  %v689_v29 = vld [vmem:[%s1117_s1 + $0x8] ss:$0 sm:$0xff] }
   0xa   :  { %816 = vmatmul.mubr.msk.f32.gmra.mrb[2].mxu1 %vm43_vm1, %v22_v9  ;;  %893 = vmatprep.subr.bf16.mxu1 %v892_v16  ;;  %v896_v26 = vpack.c.bf16 %v36_v24, %v35_v23 }
   0xb   :  { %818 = vmatprep.mubr.msk.f32.mxu1 %vm43_vm1, %v23_v14  ;;  %v707_v14 = vld [vmem:[%s1117_s1 + $0x9] ss:$0 sm:$0xff] }
   0xc   :  { %807 = vmatmul.mubr.msk.f32.gmra.mrb[4].mxu0 %vm43_vm1, %v16_v17  ;;  %897 = vmatprep.subr.bf16.mxu0 %v896_v26 }
   0xd   :  { %809 = vmatprep.mubr.msk.f32.mxu0 %vm43_vm1, %v17_v18  ;;  %895 = vmatpush3.bf16.msra.mxu1 %v892_v16 }
   0xe   :  { %819 = vmatmul.mubr.msk.f32.gmra.mrb[4].mxu1 %vm43_vm1, %v24_v19  ;;  %899 = vmatpush3.bf16.msra.mxu0 %v896_v26 }
   0xf   :  { %821 = vmatprep.mubr.msk.f32.mxu1 %vm43_vm1, %v25_v20  ;;  %901 = vmatprep.subr.bf16.mxu0 %v900_v28 }
  0x10   :  { %810 = vmatmul.mubr.msk.f32.gmra.mrb[6].mxu0 %vm43_vm1, %v18_v21 }
  0x12   :  { %822 = vmatmul.mubr.msk.f32.gmra.mrb[6].mxu1 %vm43_vm1, %v26_v22  ;;  %903 = vmatpush3.bf16.msra.mxu0 %v900_v28 }
  0xd7   :  { %v802_v30 = vpop.f32.mrb[0].mxu0 }
  0xd8   :  { %v168_v31 = vadd.f32 %v802_v30, %v689_v29  ;;  %v162_v32 = vpop.f32.mrb[1].mxu0 }
  0xd9   :  { %v163_v33 = vadd.f32 %v689_v29, %v162_v32  ;;  %v814_v34 = vpop.f32.mrb[0].mxu1 }
  0xda   :  { %v202_v35 = vpop.f32.mrb[1].mxu1  ;;  %v242_v38 = vmax.f32 %v168_v31, 0.0  ;;  %v208_v1 = vadd.f32 %v814_v34, %v689_v29 }
  0xdb   :  { %v241_v36 = vmax.f32 %v163_v33, 0.0  ;;  %v805_v37 = vpop.f32.mrb[2].mxu0  ;;  %v203_v54 = vadd.f32 %v689_v29, %v202_v35 }
  0xdc   :  { %v178_v39 = vadd.f32 %v805_v37, %v689_v29  ;;  %v172_v40 = vpop.f32.mrb[3].mxu0  ;;  %v250_v4 = vmax.f32 %v208_v1, 0.0 }
  0xdd   :  { %v173_v41 = vadd.f32 %v689_v29, %v172_v40  ;;  %832 = vmatprep.mubr.msk.f32.mxu1 %vm261_vm2, %v241_v36  ;;  %v817_v42 = vpop.f32.mrb[2].mxu1  ;;  %v249_v62 = vmax.f32 %v203_v54, 0.0 }
  0xde   :  { %833 = vmatmul.mubr.msk.f32.vlgmr.msra.gmra.mrb[8].mxu1 %vm261_vm2, %v242_v38  ;;  %v212_v43 = vpop.f32.mrb[3].mxu1  ;;  %v244_v46 = vmax.f32 %v178_v39, 0.0  ;;  %v218_v5 = vadd.f32 %v817_v42, %v689_v29 }
  0xdf   :  { %v243_v44 = vmax.f32 %v173_v41, 0.0  ;;  %v808_v45 = vpop.f32.mrb[4].mxu0  ;;  %v213_v63 = vadd.f32 %v689_v29, %v212_v43 }
  0xe0   :  { %v188_v47 = vadd.f32 %v808_v45, %v689_v29  ;;  %v182_v48 = vpop.f32.mrb[5].mxu0  ;;  %v252_v8 = vmax.f32 %v218_v5, 0.0 }
  0xe1   :  { %v183_v49 = vadd.f32 %v689_v29, %v182_v48  ;;  %835 = vmatprep.mubr.msk.f32.mxu1 %vm261_vm2, %v243_v44  ;;  %v820_v50 = vpop.f32.mrb[4].mxu1  ;;  %v251_v2 = vmax.f32 %v213_v63, 0.0  ;;  %v724_v63 = vld [vmem:[%s1117_s1 + $0xa] ss:$0 sm:$0xff] }
  0xe2   :  { %836 = vmatmul.mubr.msk.f32.gmra.mrb[10].mxu1 %vm261_vm2, %v244_v46  ;;  %v222_v51 = vpop.f32.mrb[5].mxu1  ;;  %v246_v55 = vmax.f32 %v188_v47, 0.0  ;;  %v228_v9 = vadd.f32 %v820_v50, %v689_v29 }
  0xe3   :  { %v245_v52 = vmax.f32 %v183_v49, 0.0  ;;  %v811_v53 = vpop.f32.mrb[6].mxu0  ;;  %v223_v3 = vadd.f32 %v689_v29, %v222_v51 }
  0xe4   :  { %v198_v56 = vadd.f32 %v811_v53, %v689_v29  ;;  %v192_v57 = vpop.f32.mrb[7].mxu0  ;;  %v254_v11 = vmax.f32 %v228_v9, 0.0 }
  0xe5   :  { %v193_v58 = vadd.f32 %v689_v29, %v192_v57  ;;  %838 = vmatprep.mubr.msk.f32.mxu1 %vm261_vm2, %v245_v52  ;;  %v823_v59 = vpop.f32.mrb[6].mxu1  ;;  %v253_v6 = vmax.f32 %v223_v3, 0.0 }
  0xe6   :  { %839 = vmatmul.mubr.msk.f32.gmra.mrb[12].mxu1 %vm261_vm2, %v246_v55  ;;  %v232_v60 = vpop.f32.mrb[7].mxu1  ;;  %v248_v0 = vmax.f32 %v198_v56, 0.0  ;;  %v238_v12 = vadd.f32 %v823_v59, %v689_v29 }
  0xe7   :  { %v247_v61 = vmax.f32 %v193_v58, 0.0  ;;  %v233_v7 = vadd.f32 %v689_v29, %v232_v60 }
  0xe8   :  { %v256_v13 = vmax.f32 %v238_v12, 0.0 }
  0xe9   :  { %841 = vmatprep.mubr.msk.f32.mxu1 %vm261_vm2, %v247_v61  ;;  %v255_v10 = vmax.f32 %v233_v7, 0.0 }
  0xea   :  { %842 = vmatmul.mubr.msk.f32.gmra.mrb[14].mxu1 %vm261_vm2, %v248_v0 }
  0xeb   :  { %844 = vmatprep.mubr.msk.f32.mxu1 %vm261_vm2, %v249_v62 }
  0xee   :  { %845 = vmatmul.mubr.msk.f32.gmra.mrb[16].mxu1 %vm261_vm2, %v250_v4 }
  0xef   :  { %847 = vmatprep.mubr.msk.f32.mxu1 %vm261_vm2, %v251_v2 }
  0xf2   :  { %848 = vmatmul.mubr.msk.f32.gmra.mrb[18].mxu1 %vm261_vm2, %v252_v8 }
  0xf3   :  { %850 = vmatprep.mubr.msk.f32.mxu1 %vm261_vm2, %v253_v6 }
  0xf6   :  { %851 = vmatmul.mubr.msk.f32.gmra.mrb[20].mxu1 %vm261_vm2, %v254_v11 }
  0xf7   :  { %853 = vmatprep.mubr.msk.f32.mxu1 %vm261_vm2, %v255_v10 }
  0xfa   :  { %854 = vmatmul.mubr.msk.f32.gmra.mrb[22].mxu1 %vm261_vm2, %v256_v13 }
 0x1b1   :  { %v834_v15 = vpop.f32.mrb[8].mxu1 }
 0x1b2   :  { %v382_v16 = vadd.f32 %v834_v15, %v707_v14  ;;  %v376_v17 = vpop.f32.mrb[9].mxu1 }
 0x1b3   :  { %v377_v18 = vadd.f32 %v707_v14, %v376_v17 }
 0x1b4   :  { %v456_v21 = vmax.f32 %v382_v16, 0.0 }
 0x1b5   :  { %v455_v19 = vmax.f32 %v377_v18, 0.0  ;;  %v837_v20 = vpop.f32.mrb[10].mxu1 }
 0x1b6   :  { %v392_v22 = vadd.f32 %v837_v20, %v707_v14  ;;  %v386_v23 = vpop.f32.mrb[11].mxu1 }
 0x1b7   :  { %v387_v24 = vadd.f32 %v707_v14, %v386_v23  ;;  %864 = vmatprep.mubr.msk.f32.mxu0 %vm261_vm2, %v455_v19 }
 0x1b8   :  { %865 = vmatmul.mubr.msk.f32.vlgmr.msra.gmra.mrb[8].mxu0 %vm261_vm2, %v456_v21  ;;  %v458_v27 = vmax.f32 %v392_v22, 0.0 }
 0x1b9   :  { %v457_v25 = vmax.f32 %v387_v24, 0.0  ;;  %v840_v26 = vpop.f32.mrb[12].mxu1 }
 0x1ba   :  { %v402_v28 = vadd.f32 %v840_v26, %v707_v14  ;;  %v396_v29 = vpop.f32.mrb[13].mxu1 }
 0x1bb   :  { %v397_v30 = vadd.f32 %v707_v14, %v396_v29  ;;  %867 = vmatprep.mubr.msk.f32.mxu0 %vm261_vm2, %v457_v25 }
 0x1bc   :  { %868 = vmatmul.mubr.msk.f32.gmra.mrb[10].mxu0 %vm261_vm2, %v458_v27  ;;  %v460_v33 = vmax.f32 %v402_v28, 0.0 }
 0x1bd   :  { %v459_v31 = vmax.f32 %v397_v30, 0.0  ;;  %v843_v32 = vpop.f32.mrb[14].mxu1 }
 0x1be   :  { %v412_v34 = vadd.f32 %v843_v32, %v707_v14  ;;  %v406_v35 = vpop.f32.mrb[15].mxu1 }
 0x1bf   :  { %v407_v36 = vadd.f32 %v707_v14, %v406_v35  ;;  %870 = vmatprep.mubr.msk.f32.mxu0 %vm261_vm2, %v459_v31 }
 0x1c0   :  { %871 = vmatmul.mubr.msk.f32.gmra.mrb[12].mxu0 %vm261_vm2, %v460_v33  ;;  %v462_v39 = vmax.f32 %v412_v34, 0.0 }
 0x1c1   :  { %v461_v37 = vmax.f32 %v407_v36, 0.0  ;;  %v846_v38 = vpop.f32.mrb[16].mxu1 }
 0x1c2   :  { %v422_v40 = vadd.f32 %v846_v38, %v707_v14  ;;  %v416_v41 = vpop.f32.mrb[17].mxu1 }
 0x1c3   :  { %v417_v42 = vadd.f32 %v707_v14, %v416_v41  ;;  %873 = vmatprep.mubr.msk.f32.mxu0 %vm261_vm2, %v461_v37 }
 0x1c4   :  { %874 = vmatmul.mubr.msk.f32.gmra.mrb[14].mxu0 %vm261_vm2, %v462_v39  ;;  %v464_v45 = vmax.f32 %v422_v40, 0.0 }
 0x1c5   :  { %v463_v43 = vmax.f32 %v417_v42, 0.0  ;;  %v849_v44 = vpop.f32.mrb[18].mxu1 }
 0x1c6   :  { %v432_v46 = vadd.f32 %v849_v44, %v707_v14  ;;  %v426_v47 = vpop.f32.mrb[19].mxu1 }
 0x1c7   :  { %v427_v48 = vadd.f32 %v707_v14, %v426_v47  ;;  %876 = vmatprep.mubr.msk.f32.mxu0 %vm261_vm2, %v463_v43 }
 0x1c8   :  { %877 = vmatmul.mubr.msk.f32.gmra.mrb[16].mxu0 %vm261_vm2, %v464_v45  ;;  %v466_v51 = vmax.f32 %v432_v46, 0.0 }
 0x1c9   :  { %v465_v49 = vmax.f32 %v427_v48, 0.0  ;;  %v852_v50 = vpop.f32.mrb[20].mxu1 }
 0x1ca   :  { %v442_v52 = vadd.f32 %v852_v50, %v707_v14  ;;  %v436_v53 = vpop.f32.mrb[21].mxu1 }
 0x1cb   :  { %v437_v54 = vadd.f32 %v707_v14, %v436_v53  ;;  %879 = vmatprep.mubr.msk.f32.mxu0 %vm261_vm2, %v465_v49 }
 0x1cc   :  { %880 = vmatmul.mubr.msk.f32.gmra.mrb[18].mxu0 %vm261_vm2, %v466_v51  ;;  %v468_v57 = vmax.f32 %v442_v52, 0.0 }
 0x1cd   :  { %v467_v55 = vmax.f32 %v437_v54, 0.0  ;;  %v855_v56 = vpop.f32.mrb[22].mxu1 }
 0x1ce   :  { %v452_v58 = vadd.f32 %v855_v56, %v707_v14  ;;  %v446_v59 = vpop.f32.mrb[23].mxu1 }
 0x1cf   :  { %v447_v60 = vadd.f32 %v707_v14, %v446_v59  ;;  %882 = vmatprep.mubr.msk.f32.mxu0 %vm261_vm2, %v467_v55 }
 0x1d0   :  { %883 = vmatmul.mubr.msk.f32.gmra.mrb[20].mxu0 %vm261_vm2, %v468_v57  ;;  %v470_v62 = vmax.f32 %v452_v58, 0.0 }
 0x1d1   :  { %v469_v61 = vmax.f32 %v447_v60, 0.0 }
 0x1d3   :  { %885 = vmatprep.mubr.msk.f32.mxu0 %vm261_vm2, %v469_v61 }
 0x1d4   :  { %886 = vmatmul.mubr.msk.f32.gmra.mrb[22].mxu0 %vm261_vm2, %v470_v62 }
 0x28b   :  { %v866_v0 = vpop.f32.mrb[8].mxu0 }
 0x28c   :  { %v595_v1 = vadd.f32 %v866_v0, %v724_v63  ;;  %v589_v2 = vpop.f32.mrb[9].mxu0 }
 0x28d   :  { %v590_v3 = vadd.f32 %v724_v63, %v589_v2 }
 0x28e   :  { %670 = vst.msk [vmem:[%s1119_s2 + $0x8] sm:$0xff] %vm668_vm3, %v595_v1 }
 0x28f   :  { %669 = vst.msk [vmem:[%s1119_s2] sm:$0xff] %vm668_vm3, %v590_v3  ;;  %v869_v4 = vpop.f32.mrb[10].mxu0 }
 0x290   :  { %v605_v5 = vadd.f32 %v869_v4, %v724_v63  ;;  %v599_v6 = vpop.f32.mrb[11].mxu0 }
 0x291   :  { %v600_v7 = vadd.f32 %v724_v63, %v599_v6 }
 0x292   :  { %672 = vst.msk [vmem:[%s1119_s2 + $0x18] sm:$0xff] %vm668_vm3, %v605_v5 }
 0x293   :  { %671 = vst.msk [vmem:[%s1119_s2 + $0x10] sm:$0xff] %vm668_vm3, %v600_v7  ;;  %v872_v8 = vpop.f32.mrb[12].mxu0 }
 0x294   :  { %v615_v9 = vadd.f32 %v872_v8, %v724_v63  ;;  %v609_v10 = vpop.f32.mrb[13].mxu0 }
 0x295   :  { %v610_v11 = vadd.f32 %v724_v63, %v609_v10 }
 0x296   :  { %674 = vst.msk [vmem:[%s1119_s2 + $0x28] sm:$0xff] %vm668_vm3, %v615_v9 }
 0x297   :  { %673 = vst.msk [vmem:[%s1119_s2 + $0x20] sm:$0xff] %vm668_vm3, %v610_v11  ;;  %v875_v12 = vpop.f32.mrb[14].mxu0 }
 0x298   :  { %v625_v13 = vadd.f32 %v875_v12, %v724_v63  ;;  %v619_v14 = vpop.f32.mrb[15].mxu0 }
 0x299   :  { %v620_v15 = vadd.f32 %v724_v63, %v619_v14 }
 0x29a   :  { %676 = vst.msk [vmem:[%s1119_s2 + $0x38] sm:$0xff] %vm668_vm3, %v625_v13 }
 0x29b   :  { %675 = vst.msk [vmem:[%s1119_s2 + $0x30] sm:$0xff] %vm668_vm3, %v620_v15  ;;  %v878_v16 = vpop.f32.mrb[16].mxu0 }
 0x29c   :  { %v635_v17 = vadd.f32 %v878_v16, %v724_v63  ;;  %v629_v18 = vpop.f32.mrb[17].mxu0 }
 0x29d   :  { %v630_v19 = vadd.f32 %v724_v63, %v629_v18 }
 0x29e   :  { %678 = vst.msk [vmem:[%s1119_s2 + $0x48] sm:$0xff] %vm668_vm3, %v635_v17 }
 0x29f   :  { %677 = vst.msk [vmem:[%s1119_s2 + $0x40] sm:$0xff] %vm668_vm3, %v630_v19  ;;  %v881_v20 = vpop.f32.mrb[18].mxu0 }
 0x2a0   :  { %v645_v21 = vadd.f32 %v881_v20, %v724_v63  ;;  %v639_v22 = vpop.f32.mrb[19].mxu0 }
 0x2a1   :  { %v640_v23 = vadd.f32 %v724_v63, %v639_v22 }
 0x2a2   :  { %680 = vst.msk [vmem:[%s1119_s2 + $0x58] sm:$0xff] %vm668_vm3, %v645_v21 }
 0x2a3   :  { %679 = vst.msk [vmem:[%s1119_s2 + $0x50] sm:$0xff] %vm668_vm3, %v640_v23  ;;  %v884_v24 = vpop.f32.mrb[20].mxu0 }
 0x2a4   :  { %v655_v25 = vadd.f32 %v884_v24, %v724_v63  ;;  %v649_v26 = vpop.f32.mrb[21].mxu0 }
 0x2a5   :  { %v650_v27 = vadd.f32 %v724_v63, %v649_v26 }
 0x2a6   :  { %682 = vst.msk [vmem:[%s1119_s2 + $0x68] sm:$0xff] %vm668_vm3, %v655_v25 }
 0x2a7   :  { %681 = vst.msk [vmem:[%s1119_s2 + $0x60] sm:$0xff] %vm668_vm3, %v650_v27  ;;  %v887_v28 = vpop.f32.mrb[22].mxu0 }
 0x2a8   :  { %v665_v29 = vadd.f32 %v887_v28, %v724_v63  ;;  %v659_v30 = vpop.f32.mrb[23].mxu0 }
 0x2a9   :  { %v660_v31 = vadd.f32 %v724_v63, %v659_v30 }
 0x2aa   :  { %684 = vst.msk [vmem:[%s1119_s2 + $0x78] sm:$0xff] %vm668_vm3, %v665_v29 }
 0x2ab   :  { %683 = vst.msk [vmem:[%s1119_s2 + $0x70] sm:$0xff] %vm668_vm3, %v660_v31 }

</bundles_post_ra>
